<compile_context>
chip_gen: v7x
topology: tpu7x:2x2x1
jax: 0.10.0
libtpu: 0.0.40
codegen_flags: <defaults>
</compile_context>

<pallas_src>
import jax
import jax.numpy as jnp
from jax.experimental import pallas as pl
from jax.experimental.pallas import tpu as pltpu


def _round_up8(x):
    return ((x + 7) // 8) * 8


def gru_encoder_kernel(src_ref, h0_ref, slab_ref, out_ref, gi_ref):
    """Runs all L GRU steps in one invocation.

    src_ref  : (L, I)            input sequence
    h0_ref   : (1, H)            initial hidden state (aliased with out_ref)
    slab_ref : (I_pad+H_pad+8, 3H) packed params:
                 rows [0, I)                : wih_cat = w_ih.T        (I, 3H)
                 rows [I_pad, I_pad+H)      : whh_cat = w_hh.T        (H, 3H)
                 row  I_pad+H_pad           : b_i  = [b_ir+b_hr | b_iz+b_hz | b_in]
                 row  I_pad+H_pad+1         : b_h  = [0 | 0 | b_hn]
    out_ref  : (1, H)            final hidden state
    gi_ref   : (L, 3H) VMEM scratch for the hoisted input projection
    """
    L, I = src_ref.shape
    H = h0_ref.shape[-1]
    I_pad = _round_up8(I)
    H_pad = _round_up8(H)
    w_off = I_pad
    b_off = I_pad + H_pad

    # ---- One-time loads / hoisted input projection (off the serial path) ----
    wih = slab_ref[0:I, :]                      # (I, 3H)
    whh = slab_ref[w_off:w_off + H, :]          # (H, 3H) fused gate-major weights
    b_blk = slab_ref[b_off:b_off + 8, :]        # (8, 3H) aligned bias block
    b_i = b_blk[0:1, :]                         # (1, 3H) folded input-side biases
    b_h = b_blk[1:2, :]                         # (1, 3H) = [0 | 0 | b_hn]

    # Single (L,I)@(I,3H) MXU call; biases for r/z fully folded, b_in folded.
    gi_ref[...] = jnp.dot(src_ref[...], wih,
                          preferred_element_type=jnp.float32) + b_i

    h = h0_ref[...]                             # (1, H)

    # ---- Serial recurrence: L static -> fully unrolled ----
    for i in range(L):
        # One fused recurrent matmul per step; b_hn folded into the add so
        # gh[:, 2H:3H] == W_hn h + b_hn.
        gh = jnp.dot(h, whh, preferred_element_type=jnp.float32) + b_h   # (1,3H)
        gi_row = gi_ref[i:i + 1, :]             # static-offset VMEM row load
        s = gi_row + gh                         # single (1,3H) VPU add

        r = jax.nn.sigmoid(s[:, 0:H])
        z = jax.nn.sigmoid(s[:, H:2 * H])
        n = jnp.tanh(gi_row[:, 2 * H:] + r * gh[:, 2 * H:])
        h = n + z * (h - n)                     # == (1-z)*n + z*h

    out_ref[...] = h


def prepare_encoder_params(params):
    """One-time conversion from PyTorch nn.GRUCell layout to one packed slab.

    PyTorch layout: w_ih (3H, I), w_hh (3H, H), b_ih (3H,), b_hh (3H,)
    with gate row-order [r; z; n].
    Returns a single (I_pad + H_pad + 8, 3H) f32 array.
    """
    w_ih, w_hh, b_ih, b_hh = params
    H = w_hh.shape[1]
    I = w_ih.shape[1]
    G = 3 * H
    I_pad = _round_up8(I)
    H_pad = _round_up8(H)

    wih_cat = jnp.asarray(w_ih, jnp.float32).T          # (I, 3H)
    whh_cat = jnp.asarray(w_hh, jnp.float32).T          # (H, 3H), gate-major lanes

    b_ih = jnp.asarray(b_ih, jnp.float32)
    b_hh = jnp.asarray(b_hh, jnp.float32)
    b_i = jnp.concatenate([
        b_ih[0:H] + b_hh[0:H],               # r: fold input+hidden bias
        b_ih[H:2 * H] + b_hh[H:2 * H],       # z: fold input+hidden bias
        b_ih[2 * H:3 * H],                   # n: input-side only
    ])
    b_h = jnp.concatenate([
        jnp.zeros((2 * H,), jnp.float32),
        b_hh[2 * H:3 * H],                   # b_hn stays inside r * (...)
    ])

    slab = jnp.zeros((I_pad + H_pad + 8, G), jnp.float32)
    slab = slab.at[0:I, :].set(wih_cat)
    slab = slab.at[I_pad:I_pad + H, :].set(whh_cat)
    slab = slab.at[I_pad + H_pad, :].set(b_i)
    slab = slab.at[I_pad + H_pad + 1, :].set(b_h)
    return slab


def encoder_forward(src, h, slab):
    """src: (L, input_size) f32; h: (hidden_size,) f32 -> (hidden_size,) f32."""
    L, _ = src.shape
    H = h.shape[0]
    h0 = h.reshape(1, H)

    vmem = pl.BlockSpec(memory_space=pltpu.MemorySpace.VMEM)
    out = pl.pallas_call(
        gru_encoder_kernel,
        out_shape=jax.ShapeDtypeStruct((1, H), jnp.float32),
        in_specs=[vmem, vmem, vmem],
        out_specs=vmem,
        scratch_shapes=[pltpu.VMEM((L, 3 * H), jnp.float32)],
        input_output_aliases={1: 0},   # reuse h0's (1,H) buffer for the output
    )(src, h0, slab)
    return out.reshape(H)


def init_gru_cell_params(key, input_size, hidden_size):
    """Deterministic init matching nn.GRUCell shapes (uniform +-1/sqrt(H))."""
    k = 1.0 / jnp.sqrt(hidden_size)
    k1, k2, k3, k4 = jax.random.split(key, 4)
    w_ih = jax.random.uniform(k1, (3 * hidden_size, input_size), jnp.float32, -k, k)
    w_hh = jax.random.uniform(k2, (3 * hidden_size, hidden_size), jnp.float32, -k, k)
    b_ih = jax.random.uniform(k3, (3 * hidden_size,), jnp.float32, -k, k)
    b_hh = jax.random.uniform(k4, (3 * hidden_size,), jnp.float32, -k, k)
    return w_ih, w_hh, b_ih, b_hh


def encoder_forward_ref(src, h, params):
    """Pure-JAX reference of the same GRUCell recurrence (sanity check)."""
    w_ih, w_hh, b_ih, b_hh = params
    H = h.shape[0]
    for i in range(src.shape[0]):
        x = src[i]
        gi = w_ih @ x + b_ih
        gh = w_hh @ h + b_hh
        r = jax.nn.sigmoid(gi[0:H] + gh[0:H])
        z = jax.nn.sigmoid(gi[H:2 * H] + gh[H:2 * H])
        n = jnp.tanh(gi[2 * H:] + r * gh[2 * H:])
        h = (1.0 - z) * n + z * h
    return h


if __name__ == "__main__":
    L = 8
    input_size = 16
    hidden_size = 32

    key = jax.random.PRNGKey(0)
    k_src, k_h, k_params = jax.random.split(key, 3)

    src = jax.random.normal(k_src, (L, input_size), dtype=jnp.float32)
    h0 = jax.random.normal(k_h, (hidden_size,), dtype=jnp.float32)
    params = init_gru_cell_params(k_params, input_size, hidden_size)

    # One-time parameter packing (transpose + bias folding + single slab).
    slab = prepare_encoder_params(params)

    # Reference first (the kernel call donates its own temp h0 buffer only).
    h_ref = encoder_forward_ref(src, h0, params)

    h_out = encoder_forward(src, h0, slab)
    jax.block_until_ready(h_out)

    assert jnp.allclose(h_out, h_ref, atol=1e-5, rtol=1e-5), "mismatch vs reference"
    print("KERNEL_OK")
</pallas_src>

<mosaic_0001>
module attributes {stable_mosaic.version = 11 : i64} {
  func.func @gru_encoder_kernel(%arg0: memref<8x16xf32, #tpu.memory_space<vmem>>, %arg1: memref<1x32xf32, #tpu.memory_space<vmem>>, %arg2: memref<56x96xf32, #tpu.memory_space<vmem>>, %arg3: memref<1x32xf32, #tpu.memory_space<vmem>>, %arg4: memref<8x96xf32, #tpu.memory_space<vmem>>) attributes {dimension_semantics = [], scalar_prefetch = 0 : i64, scratch_operands = 1 : i64, tpu.core_type = #tpu.core_type<tc>} {
    %c0 = arith.constant 0 : index
    %c0_0 = arith.constant 0 : index
    %0 = vector.load %arg2[%c0, %c0_0] : memref<56x96xf32, #tpu.memory_space<vmem>>, vector<16x96xf32>
    %c16 = arith.constant 16 : index
    %c0_1 = arith.constant 0 : index
    %1 = vector.load %arg2[%c16, %c0_1] : memref<56x96xf32, #tpu.memory_space<vmem>>, vector<32x96xf32>
    %c48 = arith.constant 48 : index
    %c0_2 = arith.constant 0 : index
    %2 = vector.load %arg2[%c48, %c0_2] : memref<56x96xf32, #tpu.memory_space<vmem>>, vector<8x96xf32>
    %3 = vector.extract_strided_slice %2 {offsets = [0, 0], sizes = [1, 96], strides = [1, 1]} : vector<8x96xf32> to vector<1x96xf32>
    %4 = vector.extract_strided_slice %2 {offsets = [1, 0], sizes = [1, 96], strides = [1, 1]} : vector<8x96xf32> to vector<1x96xf32>
    %c0_3 = arith.constant 0 : index
    %c0_4 = arith.constant 0 : index
    %5 = vector.load %arg0[%c0_3, %c0_4] : memref<8x16xf32, #tpu.memory_space<vmem>>, vector<8x16xf32>
    %cst = arith.constant dense<0.000000e+00> : vector<8x96xf32>
    %6 = tpu.matmul %5, %0, %cst {dimension_numbers = #tpu.dot_dimension_numbers<[1], [0], [0], [1], [0, 0, 1, 1], [], []>} : vector<8x16xf32>, vector<16x96xf32>, vector<8x96xf32> -> vector<8x96xf32>
    %7 = vector.broadcast %3 : vector<1x96xf32> to vector<8x96xf32>
    %8 = arith.addf %6, %7 : vector<8x96xf32>
    %c0_5 = arith.constant 0 : index
    %c0_6 = arith.constant 0 : index
    %9 = vector.load %arg4[%c0_5, %c0_6] : memref<8x96xf32, #tpu.memory_space<vmem>>, vector<8x96xf32>
    tpu.vector_store %arg4[%c0_5, %c0_6], %8 {strides = array<i32>} : memref<8x96xf32, #tpu.memory_space<vmem>>, vector<8x96xf32>,
    %c0_7 = arith.constant 0 : index
    %c0_8 = arith.constant 0 : index
    %10 = vector.load %arg1[%c0_7, %c0_8] : memref<1x32xf32, #tpu.memory_space<vmem>>, vector<1x32xf32>
    %cst_9 = arith.constant dense<0.000000e+00> : vector<1x96xf32>
    %11 = tpu.matmul %10, %1, %cst_9 {dimension_numbers = #tpu.dot_dimension_numbers<[1], [0], [0], [1], [0, 0, 1, 1], [], []>} : vector<1x32xf32>, vector<32x96xf32>, vector<1x96xf32> -> vector<1x96xf32>
    %12 = arith.addf %11, %4 : vector<1x96xf32>
    %c0_10 = arith.constant 0 : index
    %c0_11 = arith.constant 0 : index
    %13 = vector.load %arg4[%c0_10, %c0_11] : memref<8x96xf32, #tpu.memory_space<vmem>>, vector<1x96xf32>
    %14 = arith.addf %13, %12 : vector<1x96xf32>
    %15 = vector.extract_strided_slice %14 {offsets = [0, 0], sizes = [1, 32], strides = [1, 1]} : vector<1x96xf32> to vector<1x32xf32>
    %16 = arith.negf %15 : vector<1x32xf32>
    %17 = math.exp %16 : vector<1x32xf32>
    %cst_12 = arith.constant 1.000000e+00 : f32
    %18 = vector.broadcast %cst_12 : f32 to vector<1x32xf32>
    %19 = arith.addf %18, %17 : vector<1x32xf32>
    %20 = arith.divf %18, %19 : vector<1x32xf32>
    %21 = vector.extract_strided_slice %14 {offsets = [0, 32], sizes = [1, 32], strides = [1, 1]} : vector<1x96xf32> to vector<1x32xf32>
    %22 = arith.negf %21 : vector<1x32xf32>
    %23 = math.exp %22 : vector<1x32xf32>
    %cst_13 = arith.constant 1.000000e+00 : f32
    %24 = vector.broadcast %cst_13 : f32 to vector<1x32xf32>
    %25 = arith.addf %24, %23 : vector<1x32xf32>
    %26 = arith.divf %24, %25 : vector<1x32xf32>
    %27 = vector.extract_strided_slice %13 {offsets = [0, 64], sizes = [1, 32], strides = [1, 1]} : vector<1x96xf32> to vector<1x32xf32>
    %28 = vector.extract_strided_slice %12 {offsets = [0, 64], sizes = [1, 32], strides = [1, 1]} : vector<1x96xf32> to vector<1x32xf32>
    %29 = arith.mulf %20, %28 : vector<1x32xf32>
    %30 = arith.addf %27, %29 : vector<1x32xf32>
    %31 = math.tanh %30 : vector<1x32xf32>
    %32 = arith.subf %10, %31 : vector<1x32xf32>
    %33 = arith.mulf %26, %32 : vector<1x32xf32>
    %34 = arith.addf %31, %33 : vector<1x32xf32>
    %cst_14 = arith.constant dense<0.000000e+00> : vector<1x96xf32>
    %35 = tpu.matmul %34, %1, %cst_14 {dimension_numbers = #tpu.dot_dimension_numbers<[1], [0], [0], [1], [0, 0, 1, 1], [], []>} : vector<1x32xf32>, vector<32x96xf32>, vector<1x96xf32> -> vector<1x96xf32>
    %36 = arith.addf %35, %4 : vector<1x96xf32>
    %c1 = arith.constant 1 : index
    %c0_15 = arith.constant 0 : index
    %37 = vector.load %arg4[%c1, %c0_15] : memref<8x96xf32, #tpu.memory_space<vmem>>, vector<1x96xf32>
    %38 = arith.addf %37, %36 : vector<1x96xf32>
    %39 = vector.extract_strided_slice %38 {offsets = [0, 0], sizes = [1, 32], strides = [1, 1]} : vector<1x96xf32> to vector<1x32xf32>
    %40 = arith.negf %39 : vector<1x32xf32>
    %41 = math.exp %40 : vector<1x32xf32>
    %cst_16 = arith.constant 1.000000e+00 : f32
    %42 = vector.broadcast %cst_16 : f32 to vector<1x32xf32>
    %43 = arith.addf %42, %41 : vector<1x32xf32>
    %44 = arith.divf %42, %43 : vector<1x32xf32>
    %45 = vector.extract_strided_slice %38 {offsets = [0, 32], sizes = [1, 32], strides = [1, 1]} : vector<1x96xf32> to vector<1x32xf32>
    %46 = arith.negf %45 : vector<1x32xf32>
    %47 = math.exp %46 : vector<1x32xf32>
    %cst_17 = arith.constant 1.000000e+00 : f32
    %48 = vector.broadcast %cst_17 : f32 to vector<1x32xf32>
    %49 = arith.addf %48, %47 : vector<1x32xf32>
    %50 = arith.divf %48, %49 : vector<1x32xf32>
    %51 = vector.extract_strided_slice %37 {offsets = [0, 64], sizes = [1, 32], strides = [1, 1]} : vector<1x96xf32> to vector<1x32xf32>
    %52 = vector.extract_strided_slice %36 {offsets = [0, 64], sizes = [1, 32], strides = [1, 1]} : vector<1x96xf32> to vector<1x32xf32>
    %53 = arith.mulf %44, %52 : vector<1x32xf32>
    %54 = arith.addf %51, %53 : vector<1x32xf32>
    %55 = math.tanh %54 : vector<1x32xf32>
    %56 = arith.subf %34, %55 : vector<1x32xf32>
    %57 = arith.mulf %50, %56 : vector<1x32xf32>
    %58 = arith.addf %55, %57 : vector<1x32xf32>
    %cst_18 = arith.constant dense<0.000000e+00> : vector<1x96xf32>
    %59 = tpu.matmul %58, %1, %cst_18 {dimension_numbers = #tpu.dot_dimension_numbers<[1], [0], [0], [1], [0, 0, 1, 1], [], []>} : vector<1x32xf32>, vector<32x96xf32>, vector<1x96xf32> -> vector<1x96xf32>
    %60 = arith.addf %59, %4 : vector<1x96xf32>
    %c2 = arith.constant 2 : index
    %c0_19 = arith.constant 0 : index
    %61 = vector.load %arg4[%c2, %c0_19] : memref<8x96xf32, #tpu.memory_space<vmem>>, vector<1x96xf32>
    %62 = arith.addf %61, %60 : vector<1x96xf32>
    %63 = vector.extract_strided_slice %62 {offsets = [0, 0], sizes = [1, 32], strides = [1, 1]} : vector<1x96xf32> to vector<1x32xf32>
    %64 = arith.negf %63 : vector<1x32xf32>
    %65 = math.exp %64 : vector<1x32xf32>
    %cst_20 = arith.constant 1.000000e+00 : f32
    %66 = vector.broadcast %cst_20 : f32 to vector<1x32xf32>
    %67 = arith.addf %66, %65 : vector<1x32xf32>
    %68 = arith.divf %66, %67 : vector<1x32xf32>
    %69 = vector.extract_strided_slice %62 {offsets = [0, 32], sizes = [1, 32], strides = [1, 1]} : vector<1x96xf32> to vector<1x32xf32>
    %70 = arith.negf %69 : vector<1x32xf32>
    %71 = math.exp %70 : vector<1x32xf32>
    %cst_21 = arith.constant 1.000000e+00 : f32
    %72 = vector.broadcast %cst_21 : f32 to vector<1x32xf32>
    %73 = arith.addf %72, %71 : vector<1x32xf32>
    %74 = arith.divf %72, %73 : vector<1x32xf32>
    %75 = vector.extract_strided_slice %61 {offsets = [0, 64], sizes = [1, 32], strides = [1, 1]} : vector<1x96xf32> to vector<1x32xf32>
    %76 = vector.extract_strided_slice %60 {offsets = [0, 64], sizes = [1, 32], strides = [1, 1]} : vector<1x96xf32> to vector<1x32xf32>
    %77 = arith.mulf %68, %76 : vector<1x32xf32>
    %78 = arith.addf %75, %77 : vector<1x32xf32>
    %79 = math.tanh %78 : vector<1x32xf32>
    %80 = arith.subf %58, %79 : vector<1x32xf32>
    %81 = arith.mulf %74, %80 : vector<1x32xf32>
    %82 = arith.addf %79, %81 : vector<1x32xf32>
    %cst_22 = arith.constant dense<0.000000e+00> : vector<1x96xf32>
    %83 = tpu.matmul %82, %1, %cst_22 {dimension_numbers = #tpu.dot_dimension_numbers<[1], [0], [0], [1], [0, 0, 1, 1], [], []>} : vector<1x32xf32>, vector<32x96xf32>, vector<1x96xf32> -> vector<1x96xf32>
    %84 = arith.addf %83, %4 : vector<1x96xf32>
    %c3 = arith.constant 3 : index
    %c0_23 = arith.constant 0 : index
    %85 = vector.load %arg4[%c3, %c0_23] : memref<8x96xf32, #tpu.memory_space<vmem>>, vector<1x96xf32>
    %86 = arith.addf %85, %84 : vector<1x96xf32>
    %87 = vector.extract_strided_slice %86 {offsets = [0, 0], sizes = [1, 32], strides = [1, 1]} : vector<1x96xf32> to vector<1x32xf32>
    %88 = arith.negf %87 : vector<1x32xf32>
    %89 = math.exp %88 : vector<1x32xf32>
    %cst_24 = arith.constant 1.000000e+00 : f32
    %90 = vector.broadcast %cst_24 : f32 to vector<1x32xf32>
    %91 = arith.addf %90, %89 : vector<1x32xf32>
    %92 = arith.divf %90, %91 : vector<1x32xf32>
    %93 = vector.extract_strided_slice %86 {offsets = [0, 32], sizes = [1, 32], strides = [1, 1]} : vector<1x96xf32> to vector<1x32xf32>
    %94 = arith.negf %93 : vector<1x32xf32>
    %95 = math.exp %94 : vector<1x32xf32>
    %cst_25 = arith.constant 1.000000e+00 : f32
    %96 = vector.broadcast %cst_25 : f32 to vector<1x32xf32>
    %97 = arith.addf %96, %95 : vector<1x32xf32>
    %98 = arith.divf %96, %97 : vector<1x32xf32>
    %99 = vector.extract_strided_slice %85 {offsets = [0, 64], sizes = [1, 32], strides = [1, 1]} : vector<1x96xf32> to vector<1x32xf32>
    %100 = vector.extract_strided_slice %84 {offsets = [0, 64], sizes = [1, 32], strides = [1, 1]} : vector<1x96xf32> to vector<1x32xf32>
    %101 = arith.mulf %92, %100 : vector<1x32xf32>
    %102 = arith.addf %99, %101 : vector<1x32xf32>
    %103 = math.tanh %102 : vector<1x32xf32>
    %104 = arith.subf %82, %103 : vector<1x32xf32>
    %105 = arith.mulf %98, %104 : vector<1x32xf32>
    %106 = arith.addf %103, %105 : vector<1x32xf32>
    %cst_26 = arith.constant dense<0.000000e+00> : vector<1x96xf32>
    %107 = tpu.matmul %106, %1, %cst_26 {dimension_numbers = #tpu.dot_dimension_numbers<[1], [0], [0], [1], [0, 0, 1, 1], [], []>} : vector<1x32xf32>, vector<32x96xf32>, vector<1x96xf32> -> vector<1x96xf32>
    %108 = arith.addf %107, %4 : vector<1x96xf32>
    %c4 = arith.constant 4 : index
    %c0_27 = arith.constant 0 : index
    %109 = vector.load %arg4[%c4, %c0_27] : memref<8x96xf32, #tpu.memory_space<vmem>>, vector<1x96xf32>
    %110 = arith.addf %109, %108 : vector<1x96xf32>
    %111 = vector.extract_strided_slice %110 {offsets = [0, 0], sizes = [1, 32], strides = [1, 1]} : vector<1x96xf32> to vector<1x32xf32>
    %112 = arith.negf %111 : vector<1x32xf32>
    %113 = math.exp %112 : vector<1x32xf32>
    %cst_28 = arith.constant 1.000000e+00 : f32
    %114 = vector.broadcast %cst_28 : f32 to vector<1x32xf32>
    %115 = arith.addf %114, %113 : vector<1x32xf32>
    %116 = arith.divf %114, %115 : vector<1x32xf32>
    %117 = vector.extract_strided_slice %110 {offsets = [0, 32], sizes = [1, 32], strides = [1, 1]} : vector<1x96xf32> to vector<1x32xf32>
    %118 = arith.negf %117 : vector<1x32xf32>
    %119 = math.exp %118 : vector<1x32xf32>
    %cst_29 = arith.constant 1.000000e+00 : f32
    %120 = vector.broadcast %cst_29 : f32 to vector<1x32xf32>
    %121 = arith.addf %120, %119 : vector<1x32xf32>
    %122 = arith.divf %120, %121 : vector<1x32xf32>
    %123 = vector.extract_strided_slice %109 {offsets = [0, 64], sizes = [1, 32], strides = [1, 1]} : vector<1x96xf32> to vector<1x32xf32>
    %124 = vector.extract_strided_slice %108 {offsets = [0, 64], sizes = [1, 32], strides = [1, 1]} : vector<1x96xf32> to vector<1x32xf32>
    %125 = arith.mulf %116, %124 : vector<1x32xf32>
    %126 = arith.addf %123, %125 : vector<1x32xf32>
    %127 = math.tanh %126 : vector<1x32xf32>
    %128 = arith.subf %106, %127 : vector<1x32xf32>
    %129 = arith.mulf %122, %128 : vector<1x32xf32>
    %130 = arith.addf %127, %129 : vector<1x32xf32>
    %cst_30 = arith.constant dense<0.000000e+00> : vector<1x96xf32>
    %131 = tpu.matmul %130, %1, %cst_30 {dimension_numbers = #tpu.dot_dimension_numbers<[1], [0], [0], [1], [0, 0, 1, 1], [], []>} : vector<1x32xf32>, vector<32x96xf32>, vector<1x96xf32> -> vector<1x96xf32>
    %132 = arith.addf %131, %4 : vector<1x96xf32>
    %c5 = arith.constant 5 : index
    %c0_31 = arith.constant 0 : index
    %133 = vector.load %arg4[%c5, %c0_31] : memref<8x96xf32, #tpu.memory_space<vmem>>, vector<1x96xf32>
    %134 = arith.addf %133, %132 : vector<1x96xf32>
    %135 = vector.extract_strided_slice %134 {offsets = [0, 0], sizes = [1, 32], strides = [1, 1]} : vector<1x96xf32> to vector<1x32xf32>
    %136 = arith.negf %135 : vector<1x32xf32>
    %137 = math.exp %136 : vector<1x32xf32>
    %cst_32 = arith.constant 1.000000e+00 : f32
    %138 = vector.broadcast %cst_32 : f32 to vector<1x32xf32>
    %139 = arith.addf %138, %137 : vector<1x32xf32>
    %140 = arith.divf %138, %139 : vector<1x32xf32>
    %141 = vector.extract_strided_slice %134 {offsets = [0, 32], sizes = [1, 32], strides = [1, 1]} : vector<1x96xf32> to vector<1x32xf32>
    %142 = arith.negf %141 : vector<1x32xf32>
    %143 = math.exp %142 : vector<1x32xf32>
    %cst_33 = arith.constant 1.000000e+00 : f32
    %144 = vector.broadcast %cst_33 : f32 to vector<1x32xf32>
    %145 = arith.addf %144, %143 : vector<1x32xf32>
    %146 = arith.divf %144, %145 : vector<1x32xf32>
    %147 = vector.extract_strided_slice %133 {offsets = [0, 64], sizes = [1, 32], strides = [1, 1]} : vector<1x96xf32> to vector<1x32xf32>
    %148 = vector.extract_strided_slice %132 {offsets = [0, 64], sizes = [1, 32], strides = [1, 1]} : vector<1x96xf32> to vector<1x32xf32>
    %149 = arith.mulf %140, %148 : vector<1x32xf32>
    %150 = arith.addf %147, %149 : vector<1x32xf32>
    %151 = math.tanh %150 : vector<1x32xf32>
    %152 = arith.subf %130, %151 : vector<1x32xf32>
    %153 = arith.mulf %146, %152 : vector<1x32xf32>
    %154 = arith.addf %151, %153 : vector<1x32xf32>
    %cst_34 = arith.constant dense<0.000000e+00> : vector<1x96xf32>
    %155 = tpu.matmul %154, %1, %cst_34 {dimension_numbers = #tpu.dot_dimension_numbers<[1], [0], [0], [1], [0, 0, 1, 1], [], []>} : vector<1x32xf32>, vector<32x96xf32>, vector<1x96xf32> -> vector<1x96xf32>
    %156 = arith.addf %155, %4 : vector<1x96xf32>
    %c6 = arith.constant 6 : index
    %c0_35 = arith.constant 0 : index
    %157 = vector.load %arg4[%c6, %c0_35] : memref<8x96xf32, #tpu.memory_space<vmem>>, vector<1x96xf32>
    %158 = arith.addf %157, %156 : vector<1x96xf32>
    %159 = vector.extract_strided_slice %158 {offsets = [0, 0], sizes = [1, 32], strides = [1, 1]} : vector<1x96xf32> to vector<1x32xf32>
    %160 = arith.negf %159 : vector<1x32xf32>
    %161 = math.exp %160 : vector<1x32xf32>
    %cst_36 = arith.constant 1.000000e+00 : f32
    %162 = vector.broadcast %cst_36 : f32 to vector<1x32xf32>
    %163 = arith.addf %162, %161 : vector<1x32xf32>
    %164 = arith.divf %162, %163 : vector<1x32xf32>
    %165 = vector.extract_strided_slice %158 {offsets = [0, 32], sizes = [1, 32], strides = [1, 1]} : vector<1x96xf32> to vector<1x32xf32>
    %166 = arith.negf %165 : vector<1x32xf32>
    %167 = math.exp %166 : vector<1x32xf32>
    %cst_37 = arith.constant 1.000000e+00 : f32
    %168 = vector.broadcast %cst_37 : f32 to vector<1x32xf32>
    %169 = arith.addf %168, %167 : vector<1x32xf32>
    %170 = arith.divf %168, %169 : vector<1x32xf32>
    %171 = vector.extract_strided_slice %157 {offsets = [0, 64], sizes = [1, 32], strides = [1, 1]} : vector<1x96xf32> to vector<1x32xf32>
    %172 = vector.extract_strided_slice %156 {offsets = [0, 64], sizes = [1, 32], strides = [1, 1]} : vector<1x96xf32> to vector<1x32xf32>
    %173 = arith.mulf %164, %172 : vector<1x32xf32>
    %174 = arith.addf %171, %173 : vector<1x32xf32>
    %175 = math.tanh %174 : vector<1x32xf32>
    %176 = arith.subf %154, %175 : vector<1x32xf32>
    %177 = arith.mulf %170, %176 : vector<1x32xf32>
    %178 = arith.addf %175, %177 : vector<1x32xf32>
    %cst_38 = arith.constant dense<0.000000e+00> : vector<1x96xf32>
    %179 = tpu.matmul %178, %1, %cst_38 {dimension_numbers = #tpu.dot_dimension_numbers<[1], [0], [0], [1], [0, 0, 1, 1], [], []>} : vector<1x32xf32>, vector<32x96xf32>, vector<1x96xf32> -> vector<1x96xf32>
    %180 = arith.addf %179, %4 : vector<1x96xf32>
    %c7 = arith.constant 7 : index
    %c0_39 = arith.constant 0 : index
    %181 = vector.load %arg4[%c7, %c0_39] : memref<8x96xf32, #tpu.memory_space<vmem>>, vector<1x96xf32>
    %182 = arith.addf %181, %180 : vector<1x96xf32>
    %183 = vector.extract_strided_slice %182 {offsets = [0, 0], sizes = [1, 32], strides = [1, 1]} : vector<1x96xf32> to vector<1x32xf32>
    %184 = arith.negf %183 : vector<1x32xf32>
    %185 = math.exp %184 : vector<1x32xf32>
    %cst_40 = arith.constant 1.000000e+00 : f32
    %186 = vector.broadcast %cst_40 : f32 to vector<1x32xf32>
    %187 = arith.addf %186, %185 : vector<1x32xf32>
    %188 = arith.divf %186, %187 : vector<1x32xf32>
    %189 = vector.extract_strided_slice %182 {offsets = [0, 32], sizes = [1, 32], strides = [1, 1]} : vector<1x96xf32> to vector<1x32xf32>
    %190 = arith.negf %189 : vector<1x32xf32>
    %191 = math.exp %190 : vector<1x32xf32>
    %cst_41 = arith.constant 1.000000e+00 : f32
    %192 = vector.broadcast %cst_41 : f32 to vector<1x32xf32>
    %193 = arith.addf %192, %191 : vector<1x32xf32>
    %194 = arith.divf %192, %193 : vector<1x32xf32>
    %195 = vector.extract_strided_slice %181 {offsets = [0, 64], sizes = [1, 32], strides = [1, 1]} : vector<1x96xf32> to vector<1x32xf32>
    %196 = vector.extract_strided_slice %180 {offsets = [0, 64], sizes = [1, 32], strides = [1, 1]} : vector<1x96xf32> to vector<1x32xf32>
    %197 = arith.mulf %188, %196 : vector<1x32xf32>
    %198 = arith.addf %195, %197 : vector<1x32xf32>
    %199 = math.tanh %198 : vector<1x32xf32>
    %200 = arith.subf %178, %199 : vector<1x32xf32>
    %201 = arith.mulf %194, %200 : vector<1x32xf32>
    %202 = arith.addf %199, %201 : vector<1x32xf32>
    %c0_42 = arith.constant 0 : index
    %c0_43 = arith.constant 0 : index
    %203 = vector.load %arg3[%c0_42, %c0_43] : memref<1x32xf32, #tpu.memory_space<vmem>>, vector<1x32xf32>
    tpu.vector_store %arg3[%c0_42, %c0_43], %202 {strides = array<i32>} : memref<1x32xf32, #tpu.memory_space<vmem>>, vector<1x32xf32>,
    return
  }
}

</mosaic_0001>

<bundles_post_ra>
// kernel: tpu_custom_call.1
= control target key start
LH: loop header
LB: loop body
LE: loop exit
PB: predicated region body
PF: predicated region fallthrough
CT: control target
= control target key end

     0   :  { %8 = vsyncpa [#allocation4], 0  ;;  %s1546_s0 = inlined_call_operand.vmem [shape: f32[8,16], index: 0, kind: input, shape index: {}]   ;;  %s1547_s1 = inlined_call_operand.hbm [shape: f32[1,32], index: 1, kind: input, shape index: {}, may-alias: {1,3}]   ;;  %s1548_s2 = inlined_call_operand.hbm [shape: f32[56,96], index: 2, kind: input, shape index: {}]   ;;  %s1549_s3 = inlined_call_operand.hbm [shape: f32[1,32], index: 3, kind: output, shape index: {}, may-alias: {1,3}]  }
   0x1   :  { %9 = vsyncpa [#allocation7], 0 }
   0x2   :  { %10 = vsyncpa [#allocation5], 0  ;;  %s1354_s12 = smov [#allocation3]   ;;  %s1355_s14 = smov [#allocation6]  }
   0x3   :  { %s19_s13 = sshll.u32 %s1354_s12, 4  ;;  %s28_s15 = sshll.u32 %s1355_s14, 4  ;;  %s20_s13 = int_to_ptr.vmem [resolvable:$true] %s19_s13  ;;  %s1386_s15 = int_to_ptr.vmem [resolvable:$true] %s28_s15 }
   0x4   :  { %s1282_s18 = scalar_lea.hbm %s1547_s1, 16 }
   0x5   :  { %p1283_p0 = scmp.ne.s32.totalorder %s1547_s1, %s1282_s18  ;;  %p1286_p1 = scmp.lt.u32.totalorder %s1282_s18, %s1547_s1 }
   0x7   :  { %p1288_p2 = pnand %p1286_p1, %p1283_p0 }
   0x9   :  { %1291 = shalt.err (!%p1288_p2)
}
   0xa   :  { %s1292_s23 = scalar_lea.vmem %s20_s13, 16  ;;  %s1296_s24 = scalar_lea.vmem %s20_s13, 32 }
   0xb   :  { %p1293_p3 = scmp.ne.s32.totalorder %s20_s13, %s1292_s23  ;;  %p1297_p4 = scmp.lt.s32.totalorder %s20_s13, %s20_s13 }
   0xc   :  { %p1298_p5 = scmp.lt.s32.totalorder %s1296_s24, %s1292_s23 }
   0xe   :  { %p1299_p6 = por %p1298_p5, %p1297_p4 }
  0x10   :  { %p1300_p7 = pnand %p1299_p6, %p1293_p3 }
  0x12   :  { %1303 = shalt.err (!%p1300_p7)
}
  0x13   :  { %22 = dma.hbm_to_vmem [thread:$0]  %s1547_s1, 16, %s20_s13, [#allocation4]  }
  0x14   :  { %s1304_s29 = scalar_lea.hbm %s1548_s2, 896 }
  0x15   :  { %p1305_p8 = scmp.ne.s32.totalorder %s1548_s2, %s1304_s29  ;;  %p1308_p9 = scmp.lt.u32.totalorder %s1304_s29, %s1548_s2 }
  0x17   :  { %p1310_p10 = pnand %p1308_p9, %p1305_p8 }
  0x19   :  { %1313 = shalt.err (!%p1310_p10)
}
  0x1a   :  { %s1314_s7 = scalar_lea.vmem %s1386_s15, 896  ;;  %p1319_p12 = scmp.lt.s32.totalorder %s1386_s15, %s1386_s15 }
  0x1b   :  { %p1315_p11 = scmp.ne.s32.totalorder %s1386_s15, %s1314_s7  ;;  %p1320_p13 = scmp.lt.s32.totalorder %s1314_s7, %s1314_s7 }
  0x1d   :  { %p1321_p0 = por %p1320_p13, %p1319_p12 }
  0x1f   :  { %p1322_p1 = pnand %p1321_p0, %p1315_p11 }
  0x21   :  { %1325 = shalt.err (!%p1322_p1)
}
  0x22   :  { %s1356_s1 = smov 128   ;;  %s1357_s8 = smov 8  }
  0x23   :  { %34 = dma.hbm_to_vmem [thread:$0]  %s1548_s2, 896, %s1386_s15, [#allocation7], %s1356_s1, %s1356_s1, %s1357_s8  }
  0x24   :  { %1348 = dma.done.wait [#allocation4], 16  }
  0x25   :  { %1349 = vsyncadd [#allocation4], 4294967280 }
  0x26   :  { %1350 = dma.done.wait [#allocation7], 896  }
  0x27   :  { %1351 = vsyncadd [#allocation7], 4294966400  ;;  %v1358_v0 = vmov 0.0|0.0   ;;  %vm1359_vm0 = vmmov 0   ;;  %v1360_v1 = vmov 0.0   ;;  %v41_v2 = vld [vmem:[#allocation6] sm:$0xff]  ;;  %v49_v13 = vlaneseq }
  0x28   :  { %1171 = vmatprep.subr.bf16.mxu0 %v1358_v0  ;;  %1174 = vmatprep.subr.bf16.mxu1 %v1358_v0  ;;  %v42_v3 = vld [vmem:[#allocation6 + $0x8] sm:$0xff]  ;;  %v43_v4 = vld [vmem:[#allocation6 + $0x10] sm:$0xff]  ;;  %v44_v6 = vld [vmem:[#allocation6 + $0x18] sm:$0xff]  ;;  %vm53_vm1 = vcmask 130048   ;;  %vm133_vm2 = vcmask 261120   ;;  %vm127_vm3 = vcmask 785408  }
  0x29   :  { %1080 = vmatprep.mubr.msk.f32.mxu0 %vm1359_vm0, %v1360_v1  ;;  %1091 = vmatprep.mubr.msk.f32.mxu1 %vm1359_vm0, %v1360_v1  ;;  %v1172_v5 = vpack.c.bf16 %v42_v3, %v41_v2  ;;  %v45_v7 = vld [vmem:[#allocation6 + $0x20] sm:$0xff]  ;;  %v1423_v8 = vpack.c.bf16 %v44_v6, %v43_v4  ;;  %v46_v9 = vld [vmem:[#allocation6 + $0x28] sm:$0xff]  ;;  %v48_v10 = vld [vmem:[%s1546_s0] sm:$0xff]  ;;  %v50_v14 = vshrl.u32 %v49_v13, 7  ;;  %s1361_s0 = smov 64   ;;  %s1363_s12 = smov 32  }
  0x2a   :  { %v1429_v11 = vpack.c.bf16 %v46_v9, %v45_v7  ;;  %v129_v12 = vld [vmem:[#allocation3] sm:$0x1]  ;;  %v47_v16 = vld [vmem:[#allocation6 + $0x30] sm:$0xff]  ;;  %v1362_v35 = vmov 1966171168   ;;  %s1364_s13 = smov 96  }
  0x2b   :  { %1173 = vmatpush3.bf16.msra.mxu0 %v1172_v5  ;;  %1176 = vmatpush3.bf16.msra.mxu1 %v1423_v8  ;;  %v51_v15 = vsub.s32 0, %v50_v14  ;;  %v1448_v21 = vrot.slane %v47_v16, 1  ;;  %v228_v36 = vunpack.c.l.s4 %v1362_v35  ;;  %s1365_s14 = smov [#allocation8]   ;;  %vm998_vm4 = vcmask 253952  }
  0x2c   :  { %1180 = vmatprep.subr.bf16.mxu0 %v1358_v0  ;;  %1177 = vmatprep.subr.bf16.mxu1 %v1358_v0  ;;  %s1006_s15 = sshll.u32 %s1365_s14, 4  ;;  %s1007_s15 = int_to_ptr.vmem [resolvable:$true] %s1006_s15 }
  0x2d   :  { %v52_v17 = vrot.slane %v47_v16, %v51_v15  ;;  %v229_v37 = vunpack.c.0.s8 %v228_v36  ;;  %s1326_s16 = scalar_lea.vmem %s1007_s15, 16  ;;  %s1330_s17 = scalar_lea.vmem %s1007_s15, 32 }
  0x2e   :  { %1081 = vmatmul.mubr.msk.f32.vlgmr.msra.gmra.mrb[0].mxu0 %vm53_vm1, %v48_v10  ;;  %p1327_p2 = scmp.ne.s32.totalorder %s1007_s15, %s1326_s16  ;;  %p1331_p3 = scmp.lt.s32.totalorder %s1007_s15, %s1007_s15 }
  0x2f   :  { %1182 = vmatpush3.bf16.msra.mxu0 %v1423_v8  ;;  %1102 = vmatprep.mubr.msk.f32.mxu0 %vm1359_vm0, %v1360_v1  ;;  %v232_v38 = vsub.s32 %v229_v37, %v50_v14  ;;  %p1332_p4 = scmp.lt.s32.totalorder %s1330_s17, %s1326_s16 }
  0x30   :  { %1179 = vmatpush3.bf16.msra.mxu1 %v1429_v11  ;;  %1183 = vmatprep.subr.bf16.mxu0 %v1358_v0 }
  0x31   :  { %1186 = vmatprep.subr.bf16.mxu1 %v1358_v0  ;;  %p1333_p5 = por %p1332_p4, %p1331_p3 }
  0x33   :  { %1092 = vmatmul.mubr.msk.f32.vlgmr.msra.gmra.mrb[0].mxu1 %vm133_vm2, %v129_v12  ;;  %1185 = vmatpush3.bf16.msra.mxu0 %v1429_v11  ;;  %p1334_p6 = pnand %p1333_p5, %p1327_p2 }
  0x34   :  { %1188 = vmatpush3.bf16.msra.mxu1 %v1423_v8  ;;  %1113 = vmatprep.mubr.msk.f32.mxu1 %vm1359_vm0, %v1360_v1 }
  0x35   :  { %1189 = vmatprep.subr.bf16.mxu1 %v1358_v0  ;;  %1192 = vmatprep.subr.bf16.mxu0 %v1358_v0 }
  0x38   :  { %1191 = vmatpush3.bf16.msra.mxu1 %v1429_v11 }
  0x39   :  { %1198 = vmatprep.subr.bf16.mxu1 %v1358_v0 }
 0x101   :  { %v123_v18 = vpop.f32.mrb[0].mxu0 }
 0x102   :  { %v124_v19 = vadd.f32 %v123_v18, %v52_v17  ;;  %v1082_v20 = vpop.f32.mrb[1].mxu0 }
 0x104   :  { %128 = vst.msk [vmem:[#allocation2] sm:$0xff] %vm127_vm3, %v124_v19 }
 0x106   :  { %v203_v22 = vpop.f32.mrb[0].mxu1 }
 0x107   :  { %v204_v23 = vadd.f32 %v203_v22, %v1448_v21  ;;  %v1093_v24 = vpop.f32.mrb[1].mxu1 }
 0x109   :  { %216 = vrot.lane.b32.xlu0 %v204_v23, %s1361_s0 }
 0x10b   :  { %v207_v25 = vld [vmem:[#allocation2] sm:$0x1]  ;;  %v334_v53 = vld [vmem:[#allocation2 + $0x1] sm:$0x1]  ;;  %v439_v13 = vld [vmem:[#allocation2 + $0x2] sm:$0x1] }
 0x10c   :  { %v208_v26 = vadd.f32 %v207_v25, %v204_v23 }
 0x10e   :  { %v1018_v27 = vmul.f32 -1.442695, %v208_v26 }
 0x110   :  { %1234 = vpow2.f32 %v1018_v27 }
 0x11a   :  { %v1235_v28 = vpop.eup %1234 }
 0x11b   :  { %v212_v29 = vadd.f32 1.0, %v1235_v28 }
 0x11d   :  { %1236 = vrcp.f32 %v212_v29 }
 0x127   :  { %v1237_v30 = vpop.eup %1236 }
 0x17b   :  { %v217_v31 = vpop.permute.xlu0 %216 }
 0x17c   :  { %v219_v32 = vmul.f32 %v1237_v30, %v217_v31 }
 0x17e   :  { %221 = vrot.lane.b32.xlu0 %v219_v32, %s1361_s0 }
 0x1f0   :  { %v222_v33 = vpop.permute.xlu0 %221 }
 0x1f1   :  { %v224_v34 = vadd.f32 %v222_v33, %v207_v25 }
 0x1f3   :  { %1238 = vtanh.f32 %v224_v34  ;;  %v544_v34 = vld [vmem:[#allocation2 + $0x3] sm:$0x1] }
 0x1fd   :  { %v1239_v39 = vpop.eup %1238 }
 0x1fe   :  { %v233_v40 = vrot.slane %v1239_v39, %v232_v38 }
 0x200   :  { %v240_v41 = vrot.slane %v233_v40, %v232_v38 }
 0x202   :  { %241 = vrot.lane.b32.xlu1 %v240_v41, %s1361_s0 }
 0x274   :  { %v242_v42 = vpop.permute.xlu1 %241 }
 0x275   :  { %v244_v43 = vsub.f32 %v129_v12, %v242_v42 }
 0x277   :  { %v249_v44 = vrot.slane %v244_v43, %v51_v15 }
 0x279   :  { %250 = vrot.lane.b32.xlu1 %v249_v44, %s1363_s12 }
 0x2eb   :  { %v251_v45 = vpop.permute.xlu1 %250 }
 0x2ec   :  { %v253_v46 = vmul.f32 %v1237_v30, %v251_v45 }
 0x2ee   :  { %255 = vrot.lane.b32.xlu0 %v253_v46, %s1363_s12 }
 0x360   :  { %v256_v47 = vpop.permute.xlu0 %255 }
 0x361   :  { %v258_v48 = vadd.f32 %v1239_v39, %v256_v47 }
 0x363   :  { %260 = vrot.lane.b32.xlu1 %v258_v48, %s1361_s0 }
 0x3d5   :  { %v261_v49 = vpop.permute.xlu1 %260 }
 0x3d6   :  { %1103 = vmatmul.mubr.msk.f32.vlgmr.msra.gmra.mrb[2].mxu0 %vm133_vm2, %v261_v49 }
 0x3d7   :  { %1194 = vmatpush3.bf16.msra.mxu0 %v1423_v8  ;;  %1124 = vmatprep.mubr.msk.f32.mxu0 %vm1359_vm0, %v1360_v1 }
 0x3d8   :  { %1195 = vmatprep.subr.bf16.mxu0 %v1358_v0 }
 0x3db   :  { %1197 = vmatpush3.bf16.msra.mxu0 %v1429_v11 }
 0x3dc   :  { %1204 = vmatprep.subr.bf16.mxu0 %v1358_v0 }
 0x4a9   :  { %v330_v50 = vpop.f32.mrb[2].mxu0 }
 0x4aa   :  { %v331_v51 = vadd.f32 %v330_v50, %v1448_v21  ;;  %v1104_v52 = vpop.f32.mrb[3].mxu0 }
 0x4ac   :  { %343 = vrot.lane.b32.xlu0 %v331_v51, %s1361_s0  ;;  %v335_v54 = vadd.f32 %v334_v53, %v331_v51 }
 0x4ae   :  { %v1020_v55 = vmul.f32 -1.442695, %v335_v54  ;;  %v649_v54 = vld [vmem:[#allocation2 + $0x4] sm:$0x1] }
 0x4b0   :  { %1240 = vpow2.f32 %v1020_v55 }
 0x4ba   :  { %v1241_v56 = vpop.eup %1240 }
 0x4bb   :  { %v339_v57 = vadd.f32 1.0, %v1241_v56 }
 0x4bd   :  { %1242 = vrcp.f32 %v339_v57 }
 0x4c7   :  { %v1243_v58 = vpop.eup %1242 }
 0x51e   :  { %v344_v59 = vpop.permute.xlu0 %343 }
 0x51f   :  { %v346_v60 = vmul.f32 %v1243_v58, %v344_v59 }
 0x521   :  { %348 = vrot.lane.b32.xlu1 %v346_v60, %s1361_s0 }
 0x593   :  { %v349_v61 = vpop.permute.xlu1 %348 }
 0x594   :  { %v351_v62 = vadd.f32 %v349_v61, %v334_v53 }
 0x596   :  { %1244 = vtanh.f32 %v351_v62 }
 0x5a0   :  { %v1245_v63 = vpop.eup %1244 }
 0x5a1   :  { %v353_v2 = vsub.f32 %v258_v48, %v1245_v63 }
 0x5a3   :  { %355 = vrot.lane.b32.xlu0 %v353_v2, %s1364_s13 }
 0x615   :  { %v356_v3 = vpop.permute.xlu0 %355 }
 0x616   :  { %v358_v4 = vmul.f32 %v1243_v58, %v356_v3 }
 0x618   :  { %360 = vrot.lane.b32.xlu1 %v358_v4, %s1363_s12 }
 0x68a   :  { %v361_v5 = vpop.permute.xlu1 %360 }
 0x68b   :  { %v363_v6 = vadd.f32 %v1245_v63, %v361_v5 }
 0x68d   :  { %365 = vrot.lane.b32.xlu0 %v363_v6, %s1361_s0 }
 0x6ff   :  { %v366_v7 = vpop.permute.xlu0 %365 }
 0x700   :  { %1114 = vmatmul.mubr.msk.f32.vlgmr.msra.gmra.mrb[2].mxu1 %vm133_vm2, %v366_v7 }
 0x701   :  { %1200 = vmatpush3.bf16.msra.mxu1 %v1423_v8  ;;  %1135 = vmatprep.mubr.msk.f32.mxu1 %vm1359_vm0, %v1360_v1 }
 0x702   :  { %1201 = vmatprep.subr.bf16.mxu1 %v1358_v0 }
 0x705   :  { %1203 = vmatpush3.bf16.msra.mxu1 %v1429_v11 }
 0x706   :  { %1210 = vmatprep.subr.bf16.mxu1 %v1358_v0 }
 0x7d3   :  { %v435_v9 = vpop.f32.mrb[2].mxu1 }
 0x7d4   :  { %v436_v10 = vadd.f32 %v435_v9, %v1448_v21  ;;  %v1115_v12 = vpop.f32.mrb[3].mxu1 }
 0x7d6   :  { %448 = vrot.lane.b32.xlu1 %v436_v10, %s1361_s0  ;;  %v440_v14 = vadd.f32 %v439_v13, %v436_v10 }
 0x7d8   :  { %v1022_v15 = vmul.f32 -1.442695, %v440_v14  ;;  %v754_v14 = vld [vmem:[#allocation2 + $0x5] sm:$0x1] }
 0x7da   :  { %1246 = vpow2.f32 %v1022_v15 }
 0x7e4   :  { %v1247_v16 = vpop.eup %1246 }
 0x7e5   :  { %v444_v17 = vadd.f32 1.0, %v1247_v16 }
 0x7e7   :  { %1248 = vrcp.f32 %v444_v17 }
 0x7f1   :  { %v1249_v18 = vpop.eup %1248 }
 0x848   :  { %v449_v19 = vpop.permute.xlu1 %448 }
 0x849   :  { %v451_v20 = vmul.f32 %v1249_v18, %v449_v19 }
 0x84b   :  { %453 = vrot.lane.b32.xlu0 %v451_v20, %s1361_s0 }
 0x8bd   :  { %v454_v22 = vpop.permute.xlu0 %453 }
 0x8be   :  { %v456_v23 = vadd.f32 %v454_v22, %v439_v13 }
 0x8c0   :  { %1250 = vtanh.f32 %v456_v23 }
 0x8ca   :  { %v1251_v24 = vpop.eup %1250 }
 0x8cb   :  { %v458_v25 = vsub.f32 %v363_v6, %v1251_v24 }
 0x8cd   :  { %460 = vrot.lane.b32.xlu1 %v458_v25, %s1364_s13 }
 0x93f   :  { %v461_v26 = vpop.permute.xlu1 %460 }
 0x940   :  { %v463_v27 = vmul.f32 %v1249_v18, %v461_v26 }
 0x942   :  { %465 = vrot.lane.b32.xlu0 %v463_v27, %s1363_s12 }
 0x9b4   :  { %v466_v28 = vpop.permute.xlu0 %465 }
 0x9b5   :  { %v468_v29 = vadd.f32 %v1251_v24, %v466_v28 }
 0x9b7   :  { %470 = vrot.lane.b32.xlu1 %v468_v29, %s1361_s0 }
 0xa29   :  { %v471_v30 = vpop.permute.xlu1 %470 }
 0xa2a   :  { %1125 = vmatmul.mubr.msk.f32.vlgmr.msra.gmra.mrb[4].mxu0 %vm133_vm2, %v471_v30 }
 0xa2b   :  { %1206 = vmatpush3.bf16.msra.mxu0 %v1423_v8  ;;  %1146 = vmatprep.mubr.msk.f32.mxu0 %vm1359_vm0, %v1360_v1 }
 0xa2c   :  { %1207 = vmatprep.subr.bf16.mxu0 %v1358_v0 }
 0xa2f   :  { %1209 = vmatpush3.bf16.msra.mxu0 %v1429_v11 }
 0xa30   :  { %1216 = vmatprep.subr.bf16.mxu0 %v1358_v0 }
 0xafd   :  { %v540_v31 = vpop.f32.mrb[4].mxu0 }
 0xafe   :  { %v541_v32 = vadd.f32 %v540_v31, %v1448_v21  ;;  %v1126_v33 = vpop.f32.mrb[5].mxu0  ;;  %v859_v31 = vld [vmem:[#allocation2 + $0x6] sm:$0x1] }
 0xb00   :  { %553 = vrot.lane.b32.xlu0 %v541_v32, %s1361_s0  ;;  %v545_v35 = vadd.f32 %v544_v34, %v541_v32 }
 0xb02   :  { %v1024_v36 = vmul.f32 -1.442695, %v545_v35 }
 0xb04   :  { %1252 = vpow2.f32 %v1024_v36 }
 0xb0e   :  { %v1253_v37 = vpop.eup %1252 }
 0xb0f   :  { %v549_v38 = vadd.f32 1.0, %v1253_v37 }
 0xb11   :  { %1254 = vrcp.f32 %v549_v38 }
 0xb1b   :  { %v1255_v39 = vpop.eup %1254 }
 0xb72   :  { %v554_v40 = vpop.permute.xlu0 %553 }
 0xb73   :  { %v556_v41 = vmul.f32 %v1255_v39, %v554_v40 }
 0xb75   :  { %558 = vrot.lane.b32.xlu1 %v556_v41, %s1361_s0 }
 0xbe7   :  { %v559_v42 = vpop.permute.xlu1 %558 }
 0xbe8   :  { %v561_v43 = vadd.f32 %v559_v42, %v544_v34 }
 0xbea   :  { %1256 = vtanh.f32 %v561_v43 }
 0xbf4   :  { %v1257_v44 = vpop.eup %1256 }
 0xbf5   :  { %v563_v45 = vsub.f32 %v468_v29, %v1257_v44 }
 0xbf7   :  { %565 = vrot.lane.b32.xlu0 %v563_v45, %s1364_s13 }
 0xc69   :  { %v566_v46 = vpop.permute.xlu0 %565 }
 0xc6a   :  { %v568_v47 = vmul.f32 %v1255_v39, %v566_v46 }
 0xc6c   :  { %570 = vrot.lane.b32.xlu1 %v568_v47, %s1363_s12 }
 0xcde   :  { %v571_v48 = vpop.permute.xlu1 %570 }
 0xcdf   :  { %v573_v49 = vadd.f32 %v1257_v44, %v571_v48 }
 0xce1   :  { %575 = vrot.lane.b32.xlu0 %v573_v49, %s1361_s0 }
 0xd53   :  { %v576_v50 = vpop.permute.xlu0 %575 }
 0xd54   :  { %1136 = vmatmul.mubr.msk.f32.vlgmr.msra.gmra.mrb[4].mxu1 %vm133_vm2, %v576_v50 }
 0xd55   :  { %1212 = vmatpush3.bf16.msra.mxu1 %v1423_v8  ;;  %1157 = vmatprep.mubr.msk.f32.mxu1 %vm1359_vm0, %v1360_v1 }
 0xd56   :  { %1213 = vmatprep.subr.bf16.mxu1 %v1358_v0 }
 0xd59   :  { %1215 = vmatpush3.bf16.msra.mxu1 %v1429_v11 }
 0xe27   :  { %v645_v51 = vpop.f32.mrb[4].mxu1 }
 0xe28   :  { %v646_v52 = vadd.f32 %v645_v51, %v1448_v21  ;;  %v1137_v53 = vpop.f32.mrb[5].mxu1  ;;  %v964_v51 = vld [vmem:[#allocation2 + $0x7] sm:$0x1] }
 0xe2a   :  { %658 = vrot.lane.b32.xlu1 %v646_v52, %s1361_s0  ;;  %v650_v55 = vadd.f32 %v649_v54, %v646_v52 }
 0xe2c   :  { %v1026_v56 = vmul.f32 -1.442695, %v650_v55 }
 0xe2e   :  { %1258 = vpow2.f32 %v1026_v56 }
 0xe38   :  { %v1259_v57 = vpop.eup %1258 }
 0xe39   :  { %v654_v58 = vadd.f32 1.0, %v1259_v57 }
 0xe3b   :  { %1260 = vrcp.f32 %v654_v58 }
 0xe45   :  { %v1261_v59 = vpop.eup %1260 }
 0xe9c   :  { %v659_v60 = vpop.permute.xlu1 %658 }
 0xe9d   :  { %v661_v61 = vmul.f32 %v1261_v59, %v659_v60 }
 0xe9f   :  { %663 = vrot.lane.b32.xlu0 %v661_v61, %s1361_s0 }
 0xf11   :  { %v664_v62 = vpop.permute.xlu0 %663 }
 0xf12   :  { %v666_v63 = vadd.f32 %v664_v62, %v649_v54 }
 0xf14   :  { %1262 = vtanh.f32 %v666_v63 }
 0xf1e   :  { %v1263_v2 = vpop.eup %1262 }
 0xf1f   :  { %v668_v3 = vsub.f32 %v573_v49, %v1263_v2 }
 0xf21   :  { %670 = vrot.lane.b32.xlu1 %v668_v3, %s1364_s13 }
 0xf93   :  { %v671_v4 = vpop.permute.xlu1 %670 }
 0xf94   :  { %v673_v5 = vmul.f32 %v1261_v59, %v671_v4 }
 0xf96   :  { %675 = vrot.lane.b32.xlu0 %v673_v5, %s1363_s12 }
0x1008   :  { %v676_v6 = vpop.permute.xlu0 %675 }
0x1009   :  { %v678_v7 = vadd.f32 %v1263_v2, %v676_v6 }
0x100b   :  { %680 = vrot.lane.b32.xlu1 %v678_v7, %s1361_s0 }
0x107d   :  { %v681_v9 = vpop.permute.xlu1 %680 }
0x107e   :  { %1147 = vmatmul.mubr.msk.f32.vlgmr.msra.gmra.mrb[6].mxu0 %vm133_vm2, %v681_v9 }
0x107f   :  { %1218 = vmatpush3.bf16.msra.mxu0 %v1423_v8  ;;  %1168 = vmatprep.mubr.msk.f32.mxu0 %vm1359_vm0, %v1360_v1 }
0x1080   :  { %1219 = vmatprep.subr.bf16.mxu0 %v1358_v0 }
0x1083   :  { %1221 = vmatpush3.bf16.msra.mxu0 %v1429_v11 }
0x1151   :  { %v750_v10 = vpop.f32.mrb[6].mxu0 }
0x1152   :  { %v751_v12 = vadd.f32 %v750_v10, %v1448_v21  ;;  %v1148_v13 = vpop.f32.mrb[7].mxu0 }
0x1154   :  { %763 = vrot.lane.b32.xlu0 %v751_v12, %s1361_s0  ;;  %v755_v15 = vadd.f32 %v754_v14, %v751_v12 }
0x1156   :  { %v1028_v16 = vmul.f32 -1.442695, %v755_v15 }
0x1158   :  { %1264 = vpow2.f32 %v1028_v16 }
0x1162   :  { %v1265_v17 = vpop.eup %1264 }
0x1163   :  { %v759_v18 = vadd.f32 1.0, %v1265_v17 }
0x1165   :  { %1266 = vrcp.f32 %v759_v18 }
0x116f   :  { %v1267_v8 = vpop.eup %1266 }
0x11c6   :  { %v764_v19 = vpop.permute.xlu0 %763 }
0x11c7   :  { %v766_v1 = vmul.f32 %v1267_v8, %v764_v19 }
0x11c9   :  { %768 = vrot.lane.b32.xlu1 %v766_v1, %s1361_s0 }
0x123b   :  { %v769_v0 = vpop.permute.xlu1 %768 }
0x123c   :  { %v771_v11 = vadd.f32 %v769_v0, %v754_v14 }
0x123e   :  { %1268 = vtanh.f32 %v771_v11 }
0x1248   :  { %v1269_v20 = vpop.eup %1268 }
0x1249   :  { %v773_v22 = vsub.f32 %v678_v7, %v1269_v20 }
0x124b   :  { %775 = vrot.lane.b32.xlu0 %v773_v22, %s1364_s13 }
0x12bd   :  { %v776_v23 = vpop.permute.xlu0 %775 }
0x12be   :  { %v778_v24 = vmul.f32 %v1267_v8, %v776_v23 }
0x12c0   :  { %780 = vrot.lane.b32.xlu1 %v778_v24, %s1363_s12 }
0x1332   :  { %v781_v25 = vpop.permute.xlu1 %780 }
0x1333   :  { %v783_v26 = vadd.f32 %v1269_v20, %v781_v25 }
0x1335   :  { %785 = vrot.lane.b32.xlu0 %v783_v26, %s1361_s0 }
0x13a7   :  { %v786_v27 = vpop.permute.xlu0 %785 }
0x13a8   :  { %1158 = vmatmul.mubr.msk.f32.vlgmr.msra.gmra.mrb[6].mxu1 %vm133_vm2, %v786_v27 }
0x147b   :  { %v855_v28 = vpop.f32.mrb[6].mxu1 }
0x147c   :  { %v856_v29 = vadd.f32 %v855_v28, %v1448_v21  ;;  %v1159_v30 = vpop.f32.mrb[7].mxu1 }
0x147e   :  { %868 = vrot.lane.b32.xlu1 %v856_v29, %s1361_s0  ;;  %v860_v32 = vadd.f32 %v859_v31, %v856_v29 }
0x1480   :  { %v1030_v33 = vmul.f32 -1.442695, %v860_v32 }
0x1482   :  { %1270 = vpow2.f32 %v1030_v33 }
0x148c   :  { %v1271_v34 = vpop.eup %1270 }
0x148d   :  { %v864_v35 = vadd.f32 1.0, %v1271_v34 }
0x148f   :  { %1272 = vrcp.f32 %v864_v35 }
0x1499   :  { %v1273_v36 = vpop.eup %1272 }
0x14f0   :  { %v869_v37 = vpop.permute.xlu1 %868 }
0x14f1   :  { %v871_v38 = vmul.f32 %v1273_v36, %v869_v37 }
0x14f3   :  { %873 = vrot.lane.b32.xlu0 %v871_v38, %s1361_s0 }
0x1565   :  { %v874_v39 = vpop.permute.xlu0 %873 }
0x1566   :  { %v876_v40 = vadd.f32 %v874_v39, %v859_v31 }
0x1568   :  { %1274 = vtanh.f32 %v876_v40 }
0x1572   :  { %v1275_v41 = vpop.eup %1274 }
0x1573   :  { %v878_v42 = vsub.f32 %v783_v26, %v1275_v41 }
0x1575   :  { %880 = vrot.lane.b32.xlu1 %v878_v42, %s1364_s13 }
0x15e7   :  { %v881_v43 = vpop.permute.xlu1 %880 }
0x15e8   :  { %v883_v44 = vmul.f32 %v1273_v36, %v881_v43 }
0x15ea   :  { %885 = vrot.lane.b32.xlu0 %v883_v44, %s1363_s12 }
0x165c   :  { %v886_v45 = vpop.permute.xlu0 %885 }
0x165d   :  { %v888_v46 = vadd.f32 %v1275_v41, %v886_v45 }
0x165f   :  { %890 = vrot.lane.b32.xlu1 %v888_v46, %s1361_s0 }
0x16d1   :  { %v891_v47 = vpop.permute.xlu1 %890 }
0x16d2   :  { %1169 = vmatmul.mubr.msk.f32.vlgmr.msra.gmra.mrb[8].mxu0 %vm133_vm2, %v891_v47 }
0x17a5   :  { %v960_v48 = vpop.f32.mrb[8].mxu0 }
0x17a6   :  { %v961_v49 = vadd.f32 %v960_v48, %v1448_v21  ;;  %v1170_v50 = vpop.f32.mrb[9].mxu0 }
0x17a8   :  { %973 = vrot.lane.b32.xlu0 %v961_v49, %s1361_s0  ;;  %v965_v52 = vadd.f32 %v964_v51, %v961_v49 }
0x17aa   :  { %v1032_v53 = vmul.f32 -1.442695, %v965_v52 }
0x17ac   :  { %1276 = vpow2.f32 %v1032_v53 }
0x17b6   :  { %v1277_v54 = vpop.eup %1276 }
0x17b7   :  { %v969_v55 = vadd.f32 1.0, %v1277_v54 }
0x17b9   :  { %1278 = vrcp.f32 %v969_v55 }
0x17c3   :  { %v1279_v56 = vpop.eup %1278 }
0x181a   :  { %v974_v57 = vpop.permute.xlu0 %973 }
0x181b   :  { %v976_v58 = vmul.f32 %v1279_v56, %v974_v57 }
0x181d   :  { %978 = vrot.lane.b32.xlu1 %v976_v58, %s1361_s0 }
0x188f   :  { %v979_v59 = vpop.permute.xlu1 %978 }
0x1890   :  { %v981_v60 = vadd.f32 %v979_v59, %v964_v51 }
0x1892   :  { %1280 = vtanh.f32 %v981_v60 }
0x189c   :  { %v1281_v61 = vpop.eup %1280 }
0x189d   :  { %v983_v21 = vsub.f32 %v888_v46, %v1281_v61 }
0x189f   :  { %985 = vrot.lane.b32.xlu0 %v983_v21, %s1364_s13 }
0x1911   :  { %v986_v62 = vpop.permute.xlu0 %985 }
0x1912   :  { %v988_v63 = vmul.f32 %v1279_v56, %v986_v62 }
0x1914   :  { %990 = vrot.lane.b32.xlu1 %v988_v63, %s1363_s12 }
0x1986   :  { %v991_v2 = vpop.permute.xlu1 %990 }
0x1987   :  { %v993_v3 = vadd.f32 %v1281_v61, %v991_v2 }
0x1989   :  { %995 = vrot.lane.b32.xlu0 %v993_v3, %s1361_s0 }
0x19fb   :  { %v996_v4 = vpop.permute.xlu0 %995 }
0x19fc   :  { %999 = vst.msk [vmem:[#allocation8] sm:$0x1] %vm998_vm4, %v996_v4 }
0x19fd   :  { %1337 = shalt.err (!%p1334_p6)
}
0x19fe   :  { %s1338_s20 = scalar_lea.hbm %s1549_s3, 16 }
0x19ff   :  { %p1339_p7 = scmp.ne.s32.totalorder %s1549_s3, %s1338_s20  ;;  %p1342_p8 = scmp.lt.u32.totalorder %s1338_s20, %s1549_s3 }
0x1a01   :  { %p1344_p9 = pnand %p1342_p8, %p1339_p7 }
0x1a03   :  { %1347 = shalt.err (!%p1344_p9)
}
0x1a04   :  { %1009 = dma.vmem_to_hbm [thread:$0]  %s1007_s15, 16, %s1549_s3, [#allocation5]  }
0x1a05   :  { %1352 = dma.done.wait [#allocation5], 16  }
0x1a06   :  { %1353 = vsyncadd [#allocation5], 4294967280 }
0x1a07   :  { %1013 = vsyncpa [#allocation4], 1 }
0x1a08   :  { %1014 = vsyncpa [#allocation7], 1 }
0x1a09   :  { %1015 = vsyncpa [#allocation5], 1 }

</bundles_post_ra>
